<compile_context>
chip_gen: v5e
topology: v5e:2x2
jax: 0.10.0
libtpu: 0.0.40
codegen_flags: <defaults>
</compile_context>

<pallas_src>
import functools

import jax
import jax.numpy as jnp
from jax import lax
from jax.experimental import pallas as pl
from jax.experimental.pallas import tpu as pltpu


# ---------------- NonNegativeParametrizer (compressai) math -------------------
_REPARAM_OFFSET = 2.0 ** -18


def nonneg_init(x):
    pedestal = _REPARAM_OFFSET ** 2
    return jnp.sqrt(jnp.maximum(x + pedestal, pedestal))


def nonneg_reparam(x, minimum=0.0):
    pedestal = _REPARAM_OFFSET ** 2
    bound = (minimum + pedestal) ** 0.5
    return jnp.maximum(x, bound) ** 2 - pedestal


def _round_up(v, m):
    return (v + m - 1) // m * m


# ---------------- Kernel 1: calibration statistics ----------------------------
def _stats_kernel(x_ref, gamma_ref, beta_ref, maxn_ref, sxn_ref, sx_ref, *,
                  inverse):
    bi = pl.program_id(0)
    ti = pl.program_id(1)

    @pl.when((bi == 0) & (ti == 0))
    def _():
        maxn_ref[...] = jnp.full_like(maxn_ref, -jnp.inf)
        sxn_ref[...] = jnp.zeros_like(sxn_ref)
        sx_ref[...] = jnp.zeros_like(sx_ref)

    x = x_ref[...]                                           # (C, TP)
    x2 = x * x
    # 1x1 conv: norm^2[c, p] = beta[c] + sum_i gamma[c, i] * x[i, p]^2
    # default MXU precision (no HIGHEST multi-pass emulation); beta added in f32.
    nsq = jnp.dot(gamma_ref[...], x2,
                  preferred_element_type=jnp.float32) + beta_ref[...]
    norm = jnp.sqrt(nsq)
    if inverse:
        xn = x * norm                                        # x * sqrt(conv)
    else:
        xn = x * lax.rsqrt(nsq)                              # x / sqrt(conv) via EUP

    maxn_ref[...] = jnp.maximum(maxn_ref[...],
                                jnp.max(norm, axis=1, keepdims=True))
    sxn_ref[...] += jnp.sum(xn, axis=1, keepdims=True)
    sx_ref[...] += jnp.sum(x, axis=1, keepdims=True)
    # TODO(synk): on v7x, emitting per-tile maxes/sums instead of resident
    # accumulators would allow "parallel" semantics across both TensorCores.


# ---------------- Kernel 2: per-channel scale + shift --------------------------
def _scale_shift_kernel(x_ref, a_ref, b_ref, o_ref):
    o_ref[...] = a_ref[...] * x_ref[...] + b_ref[...]


# ---------------- Wrapper ------------------------------------------------------
def gdn_v2_forward(x, params, *, inverse=False, state=True, training=False,
                   tile_hw=2048):
    n, c, h, w = x.shape
    hw = h * w
    x3 = x.astype(jnp.float32).reshape(n, c, hw)

    # Lane-dense tile (multiple of 128), capped at tile_hw; zero-pad the pixel
    # axis so the grid has no ragged tail.  Zero padding is exact: padded
    # pixels give norm = sqrt(beta) <= any real norm (gamma, x^2 >= 0), so the
    # per-channel max is unaffected, and they contribute 0 to both sums.
    tile = min(_round_up(tile_hw, 128), _round_up(hw, 128))
    hw_pad = _round_up(hw, tile)
    if hw_pad != hw:
        x3 = jnp.pad(x3, ((0, 0), (0, 0), (0, hw_pad - hw)))
    grid = (n, hw_pad // tile)

    gamma = nonneg_reparam(params["gamma_raw"])                 # (C, C)
    beta = nonneg_reparam(params["beta_raw"], minimum=1e-6)     # (C,)
    s1 = params["s1"]

    if state and (not training):
        maxn, sxn, sx = pl.pallas_call(
            functools.partial(_stats_kernel, inverse=inverse),
            out_shape=(jax.ShapeDtypeStruct((c, 1), jnp.float32),
                       jax.ShapeDtypeStruct((c, 1), jnp.float32),
                       jax.ShapeDtypeStruct((c, 1), jnp.float32)),
            grid=grid,
            in_specs=[pl.BlockSpec((None, c, tile), lambda bi, ti: (bi, 0, ti)),
                      pl.BlockSpec((c, c), lambda bi, ti: (0, 0)),
                      pl.BlockSpec((c, 1), lambda bi, ti: (0, 0))],
            out_specs=(pl.BlockSpec((c, 1), lambda bi, ti: (0, 0)),
                       pl.BlockSpec((c, 1), lambda bi, ti: (0, 0)),
                       pl.BlockSpec((c, 1), lambda bi, ti: (0, 0))),
            compiler_params=pltpu.CompilerParams(
                dimension_semantics=("arbitrary", "arbitrary")),
        )(x3, gamma, beta.reshape(c, 1))

        count = float(n * hw)                 # true pixel count (ignores padding)
        s2 = maxn[:, 0]                       # per-channel max of norm
        mean_xn = sxn[:, 0] / count
        mean_x = sx[:, 0] / count
        offset = mean_xn - (mean_x * s2 if inverse else mean_x / s2)
        new_state = False
    else:
        s2 = params["s2"]
        offset = params["offset"]
        new_state = state

    # Fold all per-channel scalars once in the wrapper: out = a[c]*x + b[c].
    a = (s1 * s2) if inverse else (s1 / s2)
    b = offset

    out_pad = pl.pallas_call(
        _scale_shift_kernel,
        out_shape=jax.ShapeDtypeStruct((n, c, hw_pad), jnp.float32),
        grid=grid,
        in_specs=[pl.BlockSpec((None, c, tile), lambda bi, ti: (bi, 0, ti)),
                  pl.BlockSpec((c, 1), lambda bi, ti: (0, 0)),
                  pl.BlockSpec((c, 1), lambda bi, ti: (0, 0))],
        out_specs=pl.BlockSpec((None, c, tile), lambda bi, ti: (bi, 0, ti)),
        compiler_params=pltpu.CompilerParams(
            dimension_semantics=("parallel", "parallel")),
    )(x3, a.reshape(c, 1), b.reshape(c, 1))

    out = out_pad[:, :, :hw].reshape(n, c, h, w)
    return out, {"s2": s2, "offset": offset, "state": new_state}


# ---------------- Pure-JAX reference (mirrors the PyTorch forward) -------------
def ref_forward(x, params, *, inverse=False, state=True, training=False):
    gamma = nonneg_reparam(params["gamma_raw"])
    beta = nonneg_reparam(params["beta_raw"], minimum=1e-6)
    s1 = params["s1"][None, :, None, None]
    s2 = params["s2"]
    offset = params["offset"]
    if state and (not training):
        norm = jnp.sqrt(jnp.einsum("oi,nihw->nohw", gamma, x * x)
                        + beta[None, :, None, None])
        s2 = jnp.max(norm, axis=(0, 2, 3))
        s2b = s2[None, :, None, None]
        if inverse:
            offset = jnp.mean(x * norm - x * s2b, axis=(0, 2, 3))
        else:
            offset = jnp.mean(x / norm - x / s2b, axis=(0, 2, 3))
    s2b = s2[None, :, None, None]
    offb = offset[None, :, None, None]
    out = s1 * x * s2b + offb if inverse else s1 * x / s2b + offb
    return out, s2, offset


def _check(got, want, name, rtol=1e-2, atol=5e-3):
    # tolerance covers default (bf16-class) MXU precision in the conv1x1 matmul
    if not jnp.allclose(got, want, rtol=rtol, atol=atol):
        err = float(jnp.max(jnp.abs(got - want)))
        raise AssertionError(
            f"Pallas mismatch vs reference on {name}: max|diff|={err}")


if __name__ == "__main__":
    N, C, H, W = 2, 4, 16, 16
    key = jax.random.PRNGKey(0)
    x = jax.random.normal(key, (N, C, H, W), dtype=jnp.float32)

    params = {
        # beta = NonNegativeParametrizer(min=1e-6).init(ones(C))
        "beta_raw": nonneg_init(jnp.ones((C,), jnp.float32)),
        # gamma = NonNegativeParametrizer().init(0.1 * eye(C))
        "gamma_raw": nonneg_init(0.1 * jnp.eye(C, dtype=jnp.float32)),
        # GDN_v2.__init__: offset=0, s1=1, s2=0
        "offset": jnp.zeros((C,), jnp.float32),
        "s1": jnp.ones((C,), jnp.float32),
        "s2": jnp.zeros((C,), jnp.float32),
    }
    # TODO(synk): `self.momentum` is declared in GDN_v2.__init__ but never used
    # in forward, so it is omitted here.

    # First eval-mode call: state=True -> calibrates s2/offset + produces out.
    out, st = gdn_v2_forward(x, params, inverse=False, state=True,
                             training=False)
    out = jax.block_until_ready(out)
    ref_out, ref_s2, ref_off = ref_forward(x, params, inverse=False,
                                           state=True, training=False)
    assert out.shape == (N, C, H, W)
    _check(out, ref_out, "first-call output")
    _check(st["s2"], ref_s2, "s2")
    _check(st["offset"], ref_off, "offset")
    assert st["state"] is False

    # Second call: state=False -> pure scale/shift path with calibrated stats.
    params2 = dict(params, s2=st["s2"], offset=st["offset"])
    out2, _ = gdn_v2_forward(x, params2, inverse=False, state=False,
                             training=False)
    out2 = jax.block_until_ready(out2)
    ref_out2, _, _ = ref_forward(x, params2, inverse=False, state=False,
                                 training=False)
    _check(out2, ref_out2, "second-call output")

    # Inverse (IGDN) variant, calibration path.
    out_i, st_i = gdn_v2_forward(x, params, inverse=True, state=True,
                                 training=False)
    out_i = jax.block_until_ready(out_i)
    ref_i, ref_s2_i, ref_off_i = ref_forward(x, params, inverse=True,
                                             state=True, training=False)
    _check(out_i, ref_i, "inverse output")
    _check(st_i["s2"], ref_s2_i, "inverse s2")
    _check(st_i["offset"], ref_off_i, "inverse offset")

    print("KERNEL_OK")
</pallas_src>

<mosaic_0001>
module attributes {stable_mosaic.version = 11 : i64} {
  func.func @_stats_kernel(%arg0: i32, %arg1: i32, %arg2: memref<1x4x256xf32, #tpu.memory_space<vmem>>, %arg3: memref<4x4xf32, #tpu.memory_space<vmem>>, %arg4: memref<4x1xf32, #tpu.memory_space<vmem>>, %arg5: memref<4x1xf32, #tpu.memory_space<vmem>>, %arg6: memref<4x1xf32, #tpu.memory_space<vmem>>, %arg7: memref<4x1xf32, #tpu.memory_space<vmem>>) attributes {dimension_semantics = [#tpu.dimension_semantics<arbitrary>, #tpu.dimension_semantics<arbitrary>], iteration_bounds = array<i64: 2, 1>, scalar_prefetch = 0 : i64, scratch_operands = 0 : i64, tpu.core_type = #tpu.core_type<tc>, window_params = [{transform_indices = @transform_0, window_bounds = array<i64: 1, 4, 256>}, {pipeline_mode = #tpu.pipeline_mode<synchronous>, transform_indices = @transform_1, window_bounds = array<i64: 4, 4>}, {pipeline_mode = #tpu.pipeline_mode<synchronous>, transform_indices = @transform_2, window_bounds = array<i64: 4, 1>}, {pipeline_mode = #tpu.pipeline_mode<synchronous>, transform_indices = @transform_3, window_bounds = array<i64: 4, 1>}, {pipeline_mode = #tpu.pipeline_mode<synchronous>, transform_indices = @transform_4, window_bounds = array<i64: 4, 1>}, {pipeline_mode = #tpu.pipeline_mode<synchronous>, transform_indices = @transform_5, window_bounds = array<i64: 4, 1>}]} {
    %c0_i32 = arith.constant 0 : i32
    %0 = arith.cmpi eq, %arg0, %c0_i32 : i32
    %c0_i32_0 = arith.constant 0 : i32
    %1 = arith.cmpi eq, %arg1, %c0_i32_0 : i32
    %2 = arith.andi %0, %1 : i1
    %3 = arith.extui %2 : i1 to i32
    %c0_i32_1 = arith.constant 0 : i32
    %4 = arith.cmpi ne, %3, %c0_i32_1 : i32
    scf.if %4 {
      %cst_23 = arith.constant 0xFF800000 : f32
      %31 = vector.broadcast %cst_23 : f32 to vector<4x1xf32>
      %c0_24 = arith.constant 0 : index
      %c0_25 = arith.constant 0 : index
      %32 = vector.load %arg5[%c0_24, %c0_25] : memref<4x1xf32, #tpu.memory_space<vmem>>, vector<4x1xf32>
      tpu.vector_store %arg5[%c0_24, %c0_25], %31 {strides = array<i32>} : memref<4x1xf32, #tpu.memory_space<vmem>>, vector<4x1xf32>,
      %cst_26 = arith.constant 0.000000e+00 : f32
      %33 = vector.broadcast %cst_26 : f32 to vector<4x1xf32>
      %c0_27 = arith.constant 0 : index
      %c0_28 = arith.constant 0 : index
      %34 = vector.load %arg6[%c0_27, %c0_28] : memref<4x1xf32, #tpu.memory_space<vmem>>, vector<4x1xf32>
      tpu.vector_store %arg6[%c0_27, %c0_28], %33 {strides = array<i32>} : memref<4x1xf32, #tpu.memory_space<vmem>>, vector<4x1xf32>,
      %cst_29 = arith.constant 0.000000e+00 : f32
      %35 = vector.broadcast %cst_29 : f32 to vector<4x1xf32>
      %c0_30 = arith.constant 0 : index
      %c0_31 = arith.constant 0 : index
      %36 = vector.load %arg7[%c0_30, %c0_31] : memref<4x1xf32, #tpu.memory_space<vmem>>, vector<4x1xf32>
      tpu.vector_store %arg7[%c0_30, %c0_31], %35 {strides = array<i32>} : memref<4x1xf32, #tpu.memory_space<vmem>>, vector<4x1xf32>,
    } else {
    }
    %c0 = arith.constant 0 : index
    %c0_2 = arith.constant 0 : index
    %c0_3 = arith.constant 0 : index
    %5 = vector.load %arg2[%c0, %c0_2, %c0_3] : memref<1x4x256xf32, #tpu.memory_space<vmem>>, vector<1x4x256xf32>
    %6 = vector.shape_cast %5 : vector<1x4x256xf32> to vector<4x256xf32>
    %7 = arith.mulf %6, %6 : vector<4x256xf32>
    %c0_4 = arith.constant 0 : index
    %c0_5 = arith.constant 0 : index
    %8 = vector.load %arg3[%c0_4, %c0_5] : memref<4x4xf32, #tpu.memory_space<vmem>>, vector<4x4xf32>
    %cst = arith.constant dense<0.000000e+00> : vector<4x256xf32>
    %9 = tpu.matmul %8, %7, %cst {dimension_numbers = #tpu.dot_dimension_numbers<[1], [0], [0], [1], [0, 0, 1, 1], [], []>} : vector<4x4xf32>, vector<4x256xf32>, vector<4x256xf32> -> vector<4x256xf32>
    %c0_6 = arith.constant 0 : index
    %c0_7 = arith.constant 0 : index
    %10 = vector.load %arg4[%c0_6, %c0_7] : memref<4x1xf32, #tpu.memory_space<vmem>>, vector<4x1xf32>
    %11 = vector.broadcast %10 : vector<4x1xf32> to vector<4x256xf32>
    %12 = arith.addf %9, %11 : vector<4x256xf32>
    %13 = math.sqrt %12 : vector<4x256xf32>
    %14 = math.rsqrt %12 : vector<4x256xf32>
    %15 = arith.mulf %6, %14 : vector<4x256xf32>
    %c0_8 = arith.constant 0 : index
    %c0_9 = arith.constant 0 : index
    %16 = vector.load %arg5[%c0_8, %c0_9] : memref<4x1xf32, #tpu.memory_space<vmem>>, vector<4x1xf32>
    %cst_10 = arith.constant dense<0xFF800000> : vector<4xf32>
    %17 = vector.multi_reduction <maximumf>, %13, %cst_10 [1] : vector<4x256xf32> to vector<4xf32>
    %18 = vector.shape_cast %17 : vector<4xf32> to vector<4x1xf32>
    %19 = arith.maximumf %16, %18 : vector<4x1xf32>
    %c0_11 = arith.constant 0 : index
    %c0_12 = arith.constant 0 : index
    %20 = vector.load %arg5[%c0_11, %c0_12] : memref<4x1xf32, #tpu.memory_space<vmem>>, vector<4x1xf32>
    tpu.vector_store %arg5[%c0_11, %c0_12], %19 {strides = array<i32>} : memref<4x1xf32, #tpu.memory_space<vmem>>, vector<4x1xf32>,
    %c0_13 = arith.constant 0 : index
    %c0_14 = arith.constant 0 : index
    %21 = vector.load %arg6[%c0_13, %c0_14] : memref<4x1xf32, #tpu.memory_space<vmem>>, vector<4x1xf32>
    %cst_15 = arith.constant dense<0.000000e+00> : vector<4xf32>
    %22 = vector.multi_reduction <add>, %15, %cst_15 [1] : vector<4x256xf32> to vector<4xf32>
    %23 = vector.shape_cast %22 : vector<4xf32> to vector<4x1xf32>
    %24 = arith.addf %21, %23 : vector<4x1xf32>
    %c0_16 = arith.constant 0 : index
    %c0_17 = arith.constant 0 : index
    %25 = vector.load %arg6[%c0_16, %c0_17] : memref<4x1xf32, #tpu.memory_space<vmem>>, vector<4x1xf32>
    tpu.vector_store %arg6[%c0_16, %c0_17], %24 {strides = array<i32>} : memref<4x1xf32, #tpu.memory_space<vmem>>, vector<4x1xf32>,
    %c0_18 = arith.constant 0 : index
    %c0_19 = arith.constant 0 : index
    %26 = vector.load %arg7[%c0_18, %c0_19] : memref<4x1xf32, #tpu.memory_space<vmem>>, vector<4x1xf32>
    %cst_20 = arith.constant dense<0.000000e+00> : vector<4xf32>
    %27 = vector.multi_reduction <add>, %6, %cst_20 [1] : vector<4x256xf32> to vector<4xf32>
    %28 = vector.shape_cast %27 : vector<4xf32> to vector<4x1xf32>
    %29 = arith.addf %26, %28 : vector<4x1xf32>
    %c0_21 = arith.constant 0 : index
    %c0_22 = arith.constant 0 : index
    %30 = vector.load %arg7[%c0_21, %c0_22] : memref<4x1xf32, #tpu.memory_space<vmem>>, vector<4x1xf32>
    tpu.vector_store %arg7[%c0_21, %c0_22], %29 {strides = array<i32>} : memref<4x1xf32, #tpu.memory_space<vmem>>, vector<4x1xf32>,
    return
  }
  func.func @transform_0(%arg0: i32, %arg1: i32) -> (i32, i32, i32) {
    %c0_i32 = arith.constant 0 : i32
    %c0_i32_0 = arith.constant 0 : i32
    return %arg0, %c0_i32, %arg1 : i32, i32, i32
  }
  func.func @transform_1(%arg0: i32, %arg1: i32) -> (i32, i32) {
    %c0_i32 = arith.constant 0 : i32
    %c0_i32_0 = arith.constant 0 : i32
    %c0_i32_1 = arith.constant 0 : i32
    return %c0_i32, %c0_i32_0 : i32, i32
  }
  func.func @transform_2(%arg0: i32, %arg1: i32) -> (i32, i32) {
    %c0_i32 = arith.constant 0 : i32
    %c0_i32_0 = arith.constant 0 : i32
    %c0_i32_1 = arith.constant 0 : i32
    return %c0_i32, %c0_i32_0 : i32, i32
  }
  func.func @transform_3(%arg0: i32, %arg1: i32) -> (i32, i32) {
    %c0_i32 = arith.constant 0 : i32
    %c0_i32_0 = arith.constant 0 : i32
    %c0_i32_1 = arith.constant 0 : i32
    return %c0_i32, %c0_i32_0 : i32, i32
  }
  func.func @transform_4(%arg0: i32, %arg1: i32) -> (i32, i32) {
    %c0_i32 = arith.constant 0 : i32
    %c0_i32_0 = arith.constant 0 : i32
    %c0_i32_1 = arith.constant 0 : i32
    return %c0_i32, %c0_i32_0 : i32, i32
  }
  func.func @transform_5(%arg0: i32, %arg1: i32) -> (i32, i32) {
    %c0_i32 = arith.constant 0 : i32
    %c0_i32_0 = arith.constant 0 : i32
    %c0_i32_1 = arith.constant 0 : i32
    return %c0_i32, %c0_i32_0 : i32, i32
  }
}

</mosaic_0001>

<bundles_post_ra>
// kernel: tpu_custom_call.1
= control target key start
LH: loop header
LB: loop body
LE: loop exit
PB: predicated region body
PF: predicated region fallthrough
CT: control target
= control target key end

     0   :  { %11 = vsyncpa [#allocation3], 0  ;;  %s791_s0 = inlined_call_operand.hbm [shape: f32[2,4,256], index: 0, kind: input, shape index: {}]   ;;  %s792_s1 = inlined_call_operand.vmem [shape: f32[4,4], index: 1, kind: input, shape index: {}]   ;;  %s793_s2 = inlined_call_operand.vmem [shape: f32[4,1], index: 2, kind: input, shape index: {}]   ;;  %s794_s3 = inlined_call_operand.vmem [shape: f32[4,1], index: 3, kind: output, shape index: {0}]   ;;  %s795_s4 = inlined_call_operand.vmem [shape: f32[4,1], index: 4, kind: output, shape index: {1}]   ;;  %s796_s5 = inlined_call_operand.vmem [shape: f32[4,1], index: 5, kind: output, shape index: {2}]  }
   0x1   :  { %13 = vsyncpa [#allocation3 + $0x1], 0  ;;  %s659_s18 = smov 0   ;;  %s661_s19 = smov 0  }
   0x2   :  { %s663_s20 = smov 0   ;;  %s665_s21 = smov 0  }
   0x3   :  { %s667_s22 = smov 0   ;;  %s669_s23 = smov 0  }
   0x4 LB: > { %s464_s24 = sadd.s32 4294967295, %s624_s23   ;;  %s31_s25 = sadd.s32 1, %s620_s22  ;;  %s624_s23 = sphi %s669_s23, %s19_s23   ;;  %s620_s22 = sphi %s667_s22, %s803_s22   ;;  %s616_s21 = sphi %s665_s21, %s802_s21   ;;  %s612_s20 = sphi %s663_s20, %s801_s20   ;;  %s608_s19 = sphi %s661_s19, %s800_s19   ;;  %s604_s18 = sphi %s659_s18, %s799_s18  }
   0x5   : > { %p33_p0 = scmp.ge.s32.totalorder %s31_s25, 2  ;;  %s40_s26 = sadd.s32 1, %s612_s20 }
   0x6   : > { %p47_p1 = scmp.ne.s32.totalorder %s612_s20, %s608_s19  ;;  %p48_p2 = scmp.eq.s32.totalorder %s624_s23, 0 }
   0x7   : > { %s805_s25 = smov (%p33_p0, %s31_s25), 0  ;;  %p53_p4 = scmp.ne.s32.totalorder %s608_s19, %s604_s18 }
   0x8   : > { %p695_p3 = por %p48_p2, %p47_p1  ;;  %s35_s28 = ssub.s32 %s620_s22, %s805_s25 }
   0x9   : > { %p54_p5 = scmp.eq.s32.totalorder %s464_s24, 0  ;;  %p38_p6 = scmp.eq.s32.totalorder %s35_s28, 0 }
   0xa   : > { %p487_p8 = scmp.lt.s32.totalorder %s624_s23, 2  ;;  %s188_s6 = sand.u32 1, %s612_s20  }
   0xb   : > { %p702_p7 = por %p54_p5, %p53_p4  ;;  %s479_s7 = sshll.u32 %s620_s22, 3 }
   0xc   : > { %s708_s30 = scalar_select %p38_p6, %s612_s20, %s40_s26  }
   0xd   : > { %s467_s8 = sshll.u32 %s188_s6, 3  ;;  %s199_s11 = scalar_lea.hbm %s791_s0, %s479_s7 }
   0xe   : > { %s201_s12 = sshll.u32 %s199_s11, 4  ;;  %s192_s13 = scalar_lea.vmem [#allocation2], %s467_s8  ;;  %s202_s12 = int_to_ptr.hbm [resolvable:$true] %s201_s12 }
   0xf   : > { %s203_s14 = sshll.u32 %s192_s13, 4  ;;  %p484_p9 = pnand %p487_p8, %p695_p3  ;;  %s204_s14 = int_to_ptr.vmem [resolvable:$true] %s203_s14 }
  0x10   : > { %p470_p10 = scmp.ge.s32.totalorder %s624_s23, 1  ;;  %p208_p11 = scmp.lt.s32.totalorder %s624_s23, 3 }
  0x11   : > { %s189_s15 = scalar_lea.sflag [#allocation3], %s188_s6 }
  0x12   : > { %486 = dma.hbm_to_vmem [thread:$0]  (!%p484_p9), %s202_s12, 128, %s204_s14, %s189_s15  }
  0x13   : > { %p209_p12 = pnand %p470_p10, %p208_p11 }
  0x14   : > { %s214_s16 = sand.u32 (!%p209_p12), 1, %s608_s19  }
  0x15   : > { %212 = sbr.rel (%p209_p12) target bundleno = 336 (0x150), region = 32  ;;  %s471_s17 = sshll.u32 (!%p209_p12), %s214_s16, 3 }
  0x16   : > { %s215_s18 = scalar_lea.sflag (!%p209_p12), [#allocation3], %s214_s16  ;;  %s218_s24 = scalar_lea.vmem (!%p209_p12), [#allocation2], %s471_s17 }
  0x1a   : > { %599 = dma.done.wait (%p702_p7), %s215_s18, 128  }
  0x1b   : > { %601 = vsyncadd (%p702_p7), %s215_s18, 4294967168  ;;  %p242_p13 = scmp.eq.s32.totalorder %s616_s21, 0 }
  0x1c   : > { %vm248_vm0 = vcmask (%p242_p13), 3072   ;;  %v626_v0 = vmov (%p242_p13), -inf   ;;  %v627_v1 = vmov (%p242_p13), 0.0  }
  0x1d   : > { %247 = sbr.rel (!%p242_p13) target bundleno = 34 (0x22), region = 40  ;;  %249 = vst.msk [vmem:[%s794_s3] sm:$0xf] (%p242_p13), %vm248_vm0, %v626_v0 }
  0x1e   : > { %250 = vst.msk [vmem:[%s795_s4] sm:$0xf] (%p242_p13), %vm248_vm0, %v627_v1 }
  0x1f   : > { %251 = vst.msk [vmem:[%s796_s5] sm:$0xf] (%p242_p13), %vm248_vm0, %v627_v1 }
  0x22 PF: > { %v734_v2 = vld [vmem:[%s218_s24] sm:$0xff]  ;;  %v628_v4 = vmov 0   ;;  %v255_v5 = vld [vmem:[%s793_s2] sm:$0xf]  ;;  %vm269_vm1 = vcmask 1043456   ;;  %vm265_vm2 = vcmask 31744  }
  0x23   : > { %v253_v3 = vmul.f32 %v734_v2, %v734_v2  ;;  %539 = vset.pattern.permute.xlu0 %v628_v4  ;;  %v254_v6 = vld [vmem:[%s792_s1] sm:$0xf]  ;;  %vm371_vm13 = vcmask 3072  }
  0x24   : > { %258 = vperm.xlu0 %539, %v255_v5   ;;  %v364_v52 = vld [vmem:[%s794_s3] sm:$0xf] }
  0x25   : > { %262 = vst [vmem:[#allocation1] ss:$2 sm:$0xff] %v253_v3  ;;  %v373_v55 = vld [vmem:[%s795_s4] sm:$0xf] }
  0x26   : > { %v387_v58 = vld [vmem:[%s796_s5] sm:$0xf] }
  0x2c   : > { %v263_v7 = vld.sshfl [vmem:[#allocation1] sm:$0xff pattern:$0x75316420]  ;;  %v264_v8 = vld.sshfl [vmem:[#allocation1 + $0x8] sm:$0xff pattern:$0x75316420] }
  0x2d   : > { %473 = vmatpush.msk.msra.mxu0 %vm269_vm1, %v263_v7  ;;  %475 = vmatpush.msk.msra.mxu1 %vm269_vm1, %v264_v8 }
  0x2e   : > { %474 = vmatmul.msk.f32.vlgmr.msra.gmra.mxu0 %vm265_vm2, %v254_v6  ;;  %476 = vmatmul.msk.f32.vlgmr.msra.gmra.mxu1 %vm265_vm2, %v254_v6 }
  0x96   : > { %v259_v9 = vpop.permute.xlu0 %258 }
  0xab   : > { %v291_v10 = vpop.f32.mrf.mxu0  ;;  %v311_v11 = vpop.f32.mrf.mxu1 }
  0xac   : > { %v292_v12 = vadd.f32 %v291_v10, %v259_v9  ;;  %v312_v13 = vadd.f32 %v311_v11, %v259_v9 }
  0xae   : > { %540 = vrsqrt.f32 %v292_v12  ;;  %vm354_vm5 = vweird.f32 %v312_v13  ;;  %vm321_vm6 = vcmp.eq.f32.partialorder %v292_v12, inf  ;;  %vm323_vm7 = vcmp.eq.f32.partialorder %v292_v12, 0.0 }
  0xaf   : > { %542 = vrsqrt.f32 %v312_v13  ;;  %v324_v27 = vand.u32 2147483648, %v292_v12  ;;  %vm344_vm9 = vweird.f32 %v292_v12  ;;  %vm333_vm10 = vcmp.eq.f32.partialorder %v312_v13, inf }
  0xb0   : > { %v336_v31 = vand.u32 2147483648, %v312_v13  ;;  %vm335_vm12 = vcmp.eq.f32.partialorder %v312_v13, 0.0 }
  0xb4   : > { %v541_v14 = vpop.eup %540 }
  0xb5   : > { %v543_v15 = vpop.eup %542  ;;  %v315_v16 = vmul.f32 %v541_v14, %v292_v12  ;;  %vm345_vm4 = vweird.f32 %v541_v14 }
  0xb6   : > { %v327_v17 = vmul.f32 %v543_v15, %v312_v13  ;;  %vm355_vm3 = vweird.f32 %v543_v15  ;;  %vm346_vm11 = vmor %vm344_vm9, %vm345_vm4 }
  0xb7   : > { %v316_v18 = vmul.f32 %v541_v14, %v315_v16  ;;  %vm356_vm8 = vmor %vm354_vm5, %vm355_vm3 }
  0xb8   : > { %v328_v19 = vmul.f32 %v543_v15, %v327_v17 }
  0xb9   : > { %v317_v20 = vmul.f32 0.5, %v316_v18 }
  0xba   : > { %v329_v21 = vmul.f32 0.5, %v328_v19 }
  0xbb   : > { %v318_v22 = vsub.f32 1.5, %v317_v20 }
  0xbc   : > { %v330_v23 = vsub.f32 1.5, %v329_v21 }
  0xbd   : > { %v319_v24 = vmul.f32 %v541_v14, %v318_v22 }
  0xbe   : > { %v331_v25 = vmul.f32 %v543_v15, %v330_v23 }
  0xbf   : > { %v320_v26 = vmul.f32 %v319_v24, %v292_v12  ;;  %v347_v35 = vsel %vm346_vm11, %v541_v14, %v319_v24 }
  0xc0   : > { %v332_v28 = vmul.f32 %v331_v25, %v312_v13  ;;  %v357_v29 = vsel %vm356_vm8, %v543_v15, %v331_v25 }
  0xc1   : > { %v322_v30 = vsel %vm321_vm6, %v292_v12, %v320_v26  ;;  %v360_v32 = vrot.slane %v357_v29, 4 }
  0xc2   : > { %v325_v33 = vsel %vm323_vm7, %v324_v27, %v322_v30  ;;  %v334_v34 = vsel %vm333_vm10, %v312_v13, %v332_v28 }
  0xc3   : > { %v337_v36 = vsel %vm335_vm12, %v336_v31, %v334_v34  ;;  %v361_v37 = vsel %vm269_vm1, %v347_v35, %v360_v32  ;;  %v365_v38 = vsel %vm269_vm1, %v325_v33, -inf }
  0xc4   : > { %v363_v39 = vmul.f32 %v361_v37, %v734_v2  ;;  %v366_v40 = vsel %vm269_vm1, %v337_v36, -inf }
  0xc5   : > { %v367_v41 = vmax.f32 %v365_v38, %v366_v40 }
  0xc6   : > { %375 = vst [vmem:[#allocation1] ss:$2 sm:$0xff] %v363_v39 }
  0xc7   : > { %368 = vmax.xlane.f32.xlu0 %v367_v41 }
  0xcd   : > { %v376_v42 = vld.sshfl [vmem:[#allocation1] sm:$0xff pattern:$0x75316420]  ;;  %v377_v43 = vld.sshfl [vmem:[#allocation1 + $0x8] sm:$0xff pattern:$0x75316420] }
  0xce   : > { %v380_v44 = vsel %vm269_vm1, %v376_v42, 0.0  ;;  %v381_v45 = vsel %vm269_vm1, %v377_v43, 0.0  ;;  %389 = vst [vmem:[#allocation1] ss:$2 sm:$0xff] %v734_v2 }
  0xcf   : > { %v382_v46 = vadd.f32 %v381_v45, %v380_v44 }
  0xd1   : > { %383 = vadd.xlane.f32.xlu1 %v382_v46 }
  0xd5   : > { %v390_v47 = vld.sshfl [vmem:[#allocation1] sm:$0xff pattern:$0x75316420]  ;;  %v391_v48 = vld.sshfl [vmem:[#allocation1 + $0x8] sm:$0xff pattern:$0x75316420] }
  0xd6   : > { %v394_v49 = vsel %vm269_vm1, %v390_v47, 0.0  ;;  %v395_v50 = vsel %vm269_vm1, %v391_v48, 0.0 }
  0xd7   : > { %v396_v51 = vadd.f32 %v395_v50, %v394_v49 }
  0xd9   : > { %397 = vadd.xlane.f32.xlu1 %v396_v51 }
 0x13a   : > { %v369_v53 = vpop.xlane.xlu0 %368 }
 0x13b   : > { %v370_v54 = vmax.f32 %v364_v52, %v369_v53 }
 0x13d   : > { %372 = vst.msk [vmem:[%s794_s3] sm:$0xf] %vm371_vm13, %v370_v54 }
 0x144   : > { %v384_v56 = vpop.xlane.xlu1 %383 }
 0x145   : > { %v385_v57 = vadd.f32 %v384_v56, %v373_v55 }
 0x147   : > { %386 = vst.msk [vmem:[%s795_s4] sm:$0xf] %vm371_vm13, %v385_v57 }
 0x14c   : > { %v398_v59 = vpop.xlane.xlu1 %397 }
 0x14d   : > { %v399_v60 = vadd.f32 %v398_v59, %v387_v58 }
 0x14f   : > { %400 = vst.msk [vmem:[%s796_s5] sm:$0xf] %vm371_vm13, %v399_v60 }
 0x150 PF: > { %s19_s23 = sadd.s32 1, %s624_s23   ;;  %s799_s18 = smov %s608_s19 }
 0x151   : > { %p16_p0 = scmp.ge.s32.totalorder %s19_s23, 4   ;;  %s800_s19 = smov %s612_s20 }
 0x152   : > { %s801_s20 = smov %s708_s30  ;;  %s802_s21 = smov %s620_s22 }
 0x153   : > { %s803_s22 = smov %s805_s25  ;;  %18 = sbr.rel (!%p16_p0) target bundleno = 4 (0x4), region = 88 }
 0x158   :  { %424 = vsyncpa [#allocation3], 1 }
 0x159   :  { %426 = vsyncpa [#allocation3 + $0x1], 1 }

</bundles_post_ra>
